<compile_context>
chip_gen: v6e
topology: v6e:2x2x1
jax: 0.10.0
libtpu: 0.0.40
codegen_flags: <defaults>
</compile_context>

<pallas_src>
import functools
import numpy as np
import jax
import jax.numpy as jnp
from jax import lax
from jax.experimental import pallas as pl
from jax.experimental.pallas import tpu as pltpu


def _round_up(n, m):
    return -(-n // m) * m


def _stable_softplus(a):
    # max(a,0) + log(1+exp(-|a|)): never overflows (exp arg <= 0).
    return jnp.maximum(a, 0.0) + jnp.log(1.0 + jnp.exp(-jnp.abs(a)))


# --------------------------------------------------------------------------- #
# Kernel 1: MI (JSD) node scores via the Discriminator_tg bilinear form.
# --------------------------------------------------------------------------- #
def _mi_kernel(bias, x_ref, h_ref, hneg_ref, w_ref, out_ref):
    f32 = jnp.float32
    # xW[i] = x[i] @ W  -- single MXU matmul per tile, f32 accumulation.
    xW = jnp.dot(x_ref[...], w_ref[...], preferred_element_type=f32)      # (TM, n_in)

    h = h_ref[...].astype(f32)                                            # (TM, n_in)
    hn = hneg_ref[...].astype(f32)                                        # (TM, n_in)

    # Row-wise dot via a (1,n_in)x(TM,n_in)^T contraction -> lane-dense (1, TM) result.
    ones = jnp.ones((1, xW.shape[-1]), f32)
    dims = (((1,), (1,)), ((), ()))
    pos = lax.dot_general(ones, xW * h, dims, preferred_element_type=f32) + bias
    neg = lax.dot_general(ones, xW * hn, dims, preferred_element_type=f32) + bias

    out_ref[...] = _stable_softplus(pos) + _stable_softplus(neg)          # (1, TM)


def _pick_mi_row_tile(n, n_h, n_in, budget_bytes=16 << 20):
    # double-buffered bf16 inputs (x, h, h_neg) + f32 output row, per row of tile
    bytes_per_row = 2 * 2 * (n_h + 2 * n_in) + 2 * 4
    n_pad128 = _round_up(max(n, 1), 128)
    for t in (2048, 1024, 512, 256, 128):
        if t <= n_pad128 and t * bytes_per_row <= budget_bytes:
            return t
    return 128


def mi_score(x, h, h_neg, W, bias, *, matmul_dtype=jnp.bfloat16):
    """mi_jsd_score for every node. Returns (N,) float32."""
    N, n_h = x.shape
    n_in = h.shape[1]
    TM = _pick_mi_row_tile(N, n_h, n_in)
    Np = _round_up(N, TM)

    x = x.astype(matmul_dtype)
    h = h.astype(matmul_dtype)
    h_neg = h_neg.astype(matmul_dtype)
    if Np != N:
        pad = ((0, Np - N), (0, 0))
        x = jnp.pad(x, pad)
        h = jnp.pad(h, pad)
        h_neg = jnp.pad(h_neg, pad)

    kern = functools.partial(_mi_kernel, float(bias))
    out = pl.pallas_call(
        kern,
        out_shape=jax.ShapeDtypeStruct((1, Np), jnp.float32),
        grid=(Np // TM,),
        in_specs=[
            pl.BlockSpec((TM, n_h), lambda i: (i, 0)),
            pl.BlockSpec((TM, n_in), lambda i: (i, 0)),
            pl.BlockSpec((TM, n_in), lambda i: (i, 0)),
            pl.BlockSpec((n_h, n_in), lambda i: (0, 0)),
        ],
        out_specs=pl.BlockSpec((1, TM), lambda i: (0, i)),
        compiler_params=pltpu.CompilerParams(
            dimension_semantics=("parallel",),
            vmem_limit_bytes=32 * 1024 * 1024),
    )(x, h, h_neg, W.astype(matmul_dtype))
    return out[0, :N]


# --------------------------------------------------------------------------- #
# Kernel 2: structure-learning attention + per-row same-graph masked softmax.
# Row-tiled: each grid step handles TR rows of the (K, K) attention matrix.
# --------------------------------------------------------------------------- #
def _attn_kernel(slope, xr_ref, xf_ref, attl_ref, attr_ref, bcol_ref, brow_ref,
                 edge_ref, out_ref):
    f32 = jnp.float32
    dims = (((1,), (1,)), ((), ()))

    # a_col for this tile's TR rows; b_row over all K columns (tiny resident matmul).
    a_col = lax.dot_general(xr_ref[...], attl_ref[...], dims,
                            preferred_element_type=f32)                  # (TR, 1)
    b_row = lax.dot_general(attr_ref[...], xf_ref[...], dims,
                            preferred_element_type=f32)                  # (1, K)

    w = a_col + b_row                                                    # (TR, K) VPU add
    w = jnp.where(w > 0, w, slope * w)                                   # leaky_relu
    w = w + edge_ref[...]                                                # + attr * lamb

    # same-graph block-diagonal mask built in-kernel from int32 batch ids
    mask = bcol_ref[...] == brow_ref[...]                                # (TR,1)==(1,K)
    wm = jnp.where(mask, w, jnp.float32(-1e30))
    m = jnp.max(wm, axis=-1, keepdims=True)
    # No second select: exp(-1e30 - m) flushes to exactly 0.  Safe because every real
    # row contains its own same-graph diagonal, so m is always finite.
    e = jnp.exp(wm - m)
    denom = jnp.maximum(jnp.sum(e, axis=-1, keepdims=True), jnp.float32(1e-30))
    out_ref[...] = e * pl.reciprocal(denom, approx=True)                 # softmax(row)


def _pick_attn_row_tile(k, budget_bytes=16 << 20):
    # dominant per-step VMEM: double-buffered f32 edge-in tile + f32 out tile ~ 16*TR*K
    k_pad8 = _round_up(max(k, 1), 8)
    for t in (512, 256, 128, 64, 32, 16, 8):
        if t <= k_pad8 and 16 * t * k_pad8 <= budget_bytes:
            return t
    return 8


def attn_softmax(x_sel, att_l, att_r, batch_sel, induced_dense, negative_slop,
                 *, matmul_dtype=jnp.bfloat16):
    K, n_h = x_sel.shape
    TR = _pick_attn_row_tile(K)
    Kp = _round_up(K, TR)

    x_rows = x_sel
    bcol = batch_sel.astype(jnp.int32)
    edge = induced_dense.astype(jnp.float32)
    if Kp != K:
        x_rows = jnp.pad(x_rows, ((0, Kp - K), (0, 0)))
        bcol = jnp.pad(bcol, ((0, Kp - K),), constant_values=-1)  # never matches real ids
        edge = jnp.pad(edge, ((0, Kp - K), (0, 0)))
    bcol = bcol.reshape(Kp, 1)
    brow = batch_sel.reshape(1, K).astype(jnp.int32)

    kern = functools.partial(_attn_kernel, float(negative_slop))
    out = pl.pallas_call(
        kern,
        out_shape=jax.ShapeDtypeStruct((Kp, K), jnp.float32),
        grid=(Kp // TR,),
        in_specs=[
            pl.BlockSpec((TR, n_h), lambda i: (i, 0)),   # x rows for this tile
            pl.BlockSpec((K, n_h), lambda i: (0, 0)),    # x (columns), resident
            pl.BlockSpec((1, n_h), lambda i: (0, 0)),    # att_l
            pl.BlockSpec((1, n_h), lambda i: (0, 0)),    # att_r
            pl.BlockSpec((TR, 1), lambda i: (i, 0)),     # batch ids (rows)
            pl.BlockSpec((1, K), lambda i: (0, 0)),      # batch ids (cols), resident
            pl.BlockSpec((TR, K), lambda i: (i, 0)),     # induced edge attr tile
        ],
        out_specs=pl.BlockSpec((TR, K), lambda i: (i, 0)),
        compiler_params=pltpu.CompilerParams(
            dimension_semantics=("parallel",),
            vmem_limit_bytes=32 * 1024 * 1024),
    )(x_rows.astype(matmul_dtype), x_sel.astype(matmul_dtype),
      att_l.astype(matmul_dtype), att_r.astype(matmul_dtype),
      bcol, brow, edge)
    return out[:K]


# --------------------------------------------------------------------------- #
# Module wrapper (parameters + host-side graph bookkeeping glue).
# --------------------------------------------------------------------------- #
class GMIPoolPallas:
    def __init__(self, n_in, n_h, ratio=0.8, lamb=1.0, negative_slop=0.2, key=None):
        self.ratio = ratio
        self.lamb = lamb
        self.negative_slop = negative_slop
        k1, k2, k3 = jax.random.split(key, 3)
        # att: Parameter(1, 2*n_h), xavier_uniform_; split into row/col halves
        bound_att = float(np.sqrt(6.0 / (1 + 2 * n_h)))
        att = jax.random.uniform(k1, (1, 2 * n_h), jnp.float32, -bound_att, bound_att)
        self.att_l = att[:, :n_h]                 # multiplies x[row]
        self.att_r = att[:, n_h:]                 # multiplies x[col]
        # Discriminator_tg(n_in, n_h): bilinear weight (n_h, n_in) + scalar bias
        bound_w = float(np.sqrt(6.0 / (n_h + n_in)))
        self.disc_w = jax.random.uniform(k2, (n_h, n_in), jnp.float32, -bound_w, bound_w)
        self.disc_b = float(jax.random.uniform(k3, (), jnp.float32, -bound_w, bound_w))

    def __call__(self, x, edge_index, edge_attr, batch, h, neg_idx):
        x = jnp.asarray(x, jnp.float32)
        h = jnp.asarray(h, jnp.float32)
        neg_idx = jnp.asarray(neg_idx, jnp.int32)
        N = x.shape[0]

        # mean of negative-sample features: device gather of the bf16 copy of h
        # (halves gather HBM bytes vs f32), mean accumulated in f32.
        # TODO(synk): fuse the gather into the MI kernel via PrefetchScalarGridSpec +
        #             manual DMA gather to remove this extra HBM pass entirely.
        h_bf = h.astype(jnp.bfloat16)
        h_neg = jnp.mean(jnp.take(h_bf, neg_idx, axis=0).astype(jnp.float32), axis=1)

        score = mi_score(x, h_bf, h_neg, self.disc_w, self.disc_b)
        score_np = np.asarray(score)
        batch_np = np.asarray(batch)

        # TODO(synk): per-graph topk / filter_adj kept as host-side index bookkeeping;
        # a fully on-device version needs ragged per-graph top-k (not kernel work).
        perm_parts = []
        for g in np.unique(batch_np):
            idx = np.where(batch_np == g)[0]
            k = int(np.ceil(self.ratio * idx.size))
            order = idx[np.argsort(-score_np[idx], kind="stable")][:k]
            perm_parts.append(order)
        perm = np.concatenate(perm_parts)
        K = perm.size

        x_sel = x[jnp.asarray(perm)]
        batch_sel = batch_np[perm].astype(np.int32)

        # filter_adj: keep edges whose endpoints survived, remap to new ids
        old2new = -np.ones((N,), np.int64)
        old2new[perm] = np.arange(K)
        ei = np.asarray(edge_index)
        keep = (old2new[ei[0]] >= 0) & (old2new[ei[1]] >= 0)
        ind_r = old2new[ei[0, keep]].astype(np.int32)
        ind_c = old2new[ei[1, keep]].astype(np.int32)
        if edge_attr is None:
            ind_attr = np.ones((ind_r.size,), np.float32)
        else:
            ind_attr = np.asarray(edge_attr, np.float32)[keep]

        # adj[ind_r, ind_c] += attr * lamb -- built on device (no host K*K + H2D copy)
        induced_dense = jnp.zeros((K, K), jnp.float32).at[
            jnp.asarray(ind_r), jnp.asarray(ind_c)
        ].add(jnp.asarray(ind_attr * self.lamb, jnp.float32))

        adj_attn = attn_softmax(x_sel, self.att_l, self.att_r,
                                jnp.asarray(batch_sel),
                                induced_dense, self.negative_slop)

        # dense_to_sparse on host (glue)
        adj_np = np.asarray(adj_attn)
        nr, nc = np.nonzero(adj_np)
        new_edge_index = np.stack([nr, nc])
        new_edge_attr = adj_np[nr, nc]
        aux = {"score": score, "induced_dense": np.asarray(induced_dense), "perm": perm}
        return (x_sel, new_edge_index, new_edge_attr, jnp.asarray(batch_sel),
                adj_attn, aux)


# --------------------------------------------------------------------------- #
if __name__ == "__main__":
    key = jax.random.PRNGKey(0)
    n_in, n_h = 32, 16
    nodes_per_graph, n_graphs = 8, 2
    N = nodes_per_graph * n_graphs
    neg_num = 4

    kx, kh, kp = jax.random.split(key, 3)
    x = jax.random.normal(kx, (N, n_h), jnp.float32)    # node features after conv
    h = jax.random.normal(kh, (N, n_in), jnp.float32)   # node features before conv
    batch = jnp.asarray(np.repeat(np.arange(n_graphs), nodes_per_graph).astype(np.int32))

    # ring edges inside each graph (both directions), edge_attr = None
    src, dst = [], []
    for g in range(n_graphs):
        off = g * nodes_per_graph
        for i in range(nodes_per_graph):
            j = (i + 1) % nodes_per_graph
            src += [off + i, off + j]
            dst += [off + j, off + i]
    edge_index = np.stack([np.array(src), np.array(dst)])

    # deterministic negative sampling: negatives come from the other graph
    neg_idx = np.zeros((N, neg_num), np.int32)
    for i in range(N):
        other = 1 - (i // nodes_per_graph)
        for k in range(neg_num):
            neg_idx[i, k] = other * nodes_per_graph + (i + k + 1) % nodes_per_graph

    pool = GMIPoolPallas(n_in, n_h, ratio=0.5, lamb=1.0, negative_slop=0.2, key=kp)
    x_out, new_ei, new_ea, batch_out, adj_attn, aux = pool(
        x, edge_index, None, batch, h, neg_idx)
    jax.block_until_ready(x_out)
    jax.block_until_ready(adj_attn)

    # ---------------- reference checks (numpy on bf16-rounded kernel inputs) ----
    def _bf16(a):
        return np.asarray(jnp.asarray(a, jnp.float32).astype(jnp.bfloat16)
                          .astype(jnp.float32))

    x_np, h_np = np.asarray(x), np.asarray(h)
    xb, hb, Wb = _bf16(x_np), _bf16(h_np), _bf16(pool.disc_w)
    hnb = _bf16(hb[neg_idx].astype(np.float32).mean(axis=1))
    sp = lambda a: np.maximum(a, 0.0) + np.log1p(np.exp(-np.abs(a)))
    xW = xb @ Wb                                       # (N, n_in) f32
    pos_ref = (xW * hb).sum(-1) + pool.disc_b
    neg_ref = (xW * hnb).sum(-1) + pool.disc_b
    score_ref = sp(pos_ref) + sp(neg_ref)
    score_np = np.asarray(aux["score"])
    assert np.isfinite(score_np).all()
    assert np.allclose(score_np, score_ref, atol=8e-2, rtol=2e-2), \
        float(np.abs(score_np - score_ref).max())

    K = x_out.shape[0]
    xsb = _bf16(np.asarray(x_out))
    alb, arb = _bf16(pool.att_l), _bf16(pool.att_r)
    batch_sel_np = np.asarray(batch_out)
    a = xsb @ alb.T                                  # (K, 1)
    b = xsb @ arb.T                                  # (K, 1)
    w = a + b.T
    slope = pool.negative_slop
    w = np.where(w > 0, w, slope * w) + aux["induced_dense"]
    mask = batch_sel_np[:, None] == batch_sel_np[None, :]
    wm = np.where(mask, w, -1e30)
    e = np.where(mask, np.exp(wm - wm.max(axis=-1, keepdims=True)), 0.0)
    adj_ref = e / e.sum(axis=-1, keepdims=True)

    adj_np = np.asarray(adj_attn)
    assert x_out.shape == (8, n_h)
    assert np.isfinite(adj_np).all()
    assert np.allclose(adj_np, adj_ref, atol=2e-2), float(np.abs(adj_np - adj_ref).max())
    # per-row softmax over same-graph neighbours sums to 1
    row_sums = adj_np.sum(axis=-1)
    assert np.allclose(row_sums, 1.0, atol=5e-3)
    print("KERNEL_OK")
</pallas_src>

<mosaic_0001>
module attributes {stable_mosaic.version = 11 : i64} {
  func.func @_mi_kernel(%arg0: i32, %arg1: memref<128x16xbf16, #tpu.memory_space<vmem>>, %arg2: memref<128x32xbf16, #tpu.memory_space<vmem>>, %arg3: memref<128x32xbf16, #tpu.memory_space<vmem>>, %arg4: memref<16x32xbf16, #tpu.memory_space<vmem>>, %arg5: memref<1x128xf32, #tpu.memory_space<vmem>>) attributes {dimension_semantics = [#tpu.dimension_semantics<parallel>], iteration_bounds = array<i64: 1>, scalar_prefetch = 0 : i64, scratch_operands = 0 : i64, tpu.core_type = #tpu.core_type<tc>, window_params = [{transform_indices = @transform_0, window_bounds = array<i64: 128, 16>}, {transform_indices = @transform_1, window_bounds = array<i64: 128, 32>}, {transform_indices = @transform_2, window_bounds = array<i64: 128, 32>}, {pipeline_mode = #tpu.pipeline_mode<synchronous>, transform_indices = @transform_3, window_bounds = array<i64: 16, 32>}, {transform_indices = @transform_4, window_bounds = array<i64: 1, 128>}]} {
    %c0 = arith.constant 0 : index
    %c0_0 = arith.constant 0 : index
    %0 = vector.load %arg1[%c0, %c0_0] : memref<128x16xbf16, #tpu.memory_space<vmem>>, vector<128x16xbf16>
    %c0_1 = arith.constant 0 : index
    %c0_2 = arith.constant 0 : index
    %1 = vector.load %arg4[%c0_1, %c0_2] : memref<16x32xbf16, #tpu.memory_space<vmem>>, vector<16x32xbf16>
    %cst = arith.constant dense<0.000000e+00> : vector<128x32xf32>
    %2 = tpu.matmul %0, %1, %cst {dimension_numbers = #tpu.dot_dimension_numbers<[1], [0], [0], [1], [0, 0, 1, 1], [], []>} : vector<128x16xbf16>, vector<16x32xbf16>, vector<128x32xf32> -> vector<128x32xf32>
    %c0_3 = arith.constant 0 : index
    %c0_4 = arith.constant 0 : index
    %3 = vector.load %arg2[%c0_3, %c0_4] : memref<128x32xbf16, #tpu.memory_space<vmem>>, vector<128x32xbf16>
    %4 = arith.extf %3 : vector<128x32xbf16> to vector<128x32xf32>
    %c0_5 = arith.constant 0 : index
    %c0_6 = arith.constant 0 : index
    %5 = vector.load %arg3[%c0_5, %c0_6] : memref<128x32xbf16, #tpu.memory_space<vmem>>, vector<128x32xbf16>
    %6 = arith.extf %5 : vector<128x32xbf16> to vector<128x32xf32>
    %cst_7 = arith.constant 1.000000e+00 : f32
    %7 = vector.broadcast %cst_7 : f32 to vector<1x32xf32>
    %8 = arith.mulf %2, %4 : vector<128x32xf32>
    %cst_8 = arith.constant dense<0.000000e+00> : vector<1x128xf32>
    %9 = tpu.matmul %7, %8, %cst_8 {dimension_numbers = #tpu.dot_dimension_numbers<[1], [1], [0], [0], [0, 0, 1, 0], [], []>} : vector<1x32xf32>, vector<128x32xf32>, vector<1x128xf32> -> vector<1x128xf32>
    %cst_9 = arith.constant 0.17159988 : f32
    %10 = vector.broadcast %cst_9 : f32 to vector<1x128xf32>
    %11 = arith.addf %9, %10 : vector<1x128xf32>
    %12 = arith.mulf %2, %6 : vector<128x32xf32>
    %cst_10 = arith.constant dense<0.000000e+00> : vector<1x128xf32>
    %13 = tpu.matmul %7, %12, %cst_10 {dimension_numbers = #tpu.dot_dimension_numbers<[1], [1], [0], [0], [0, 0, 1, 0], [], []>} : vector<1x32xf32>, vector<128x32xf32>, vector<1x128xf32> -> vector<1x128xf32>
    %cst_11 = arith.constant 0.17159988 : f32
    %14 = vector.broadcast %cst_11 : f32 to vector<1x128xf32>
    %15 = arith.addf %13, %14 : vector<1x128xf32>
    %cst_12 = arith.constant 0.000000e+00 : f32
    %16 = vector.broadcast %cst_12 : f32 to vector<1x128xf32>
    %17 = arith.maximumf %11, %16 : vector<1x128xf32>
    %18 = math.absf %11 : vector<1x128xf32>
    %cst_13 = arith.constant 0.000000e+00 : f32
    %19 = vector.broadcast %cst_13 : f32 to vector<1x128xf32>
    %20 = arith.subf %19, %18 : vector<1x128xf32>
    %21 = math.exp %20 : vector<1x128xf32>
    %cst_14 = arith.constant 1.000000e+00 : f32
    %22 = vector.broadcast %cst_14 : f32 to vector<1x128xf32>
    %23 = arith.addf %22, %21 : vector<1x128xf32>
    %24 = math.log %23 : vector<1x128xf32>
    %25 = arith.addf %17, %24 : vector<1x128xf32>
    %cst_15 = arith.constant 0.000000e+00 : f32
    %26 = vector.broadcast %cst_15 : f32 to vector<1x128xf32>
    %27 = arith.maximumf %15, %26 : vector<1x128xf32>
    %28 = math.absf %15 : vector<1x128xf32>
    %cst_16 = arith.constant 0.000000e+00 : f32
    %29 = vector.broadcast %cst_16 : f32 to vector<1x128xf32>
    %30 = arith.subf %29, %28 : vector<1x128xf32>
    %31 = math.exp %30 : vector<1x128xf32>
    %cst_17 = arith.constant 1.000000e+00 : f32
    %32 = vector.broadcast %cst_17 : f32 to vector<1x128xf32>
    %33 = arith.addf %32, %31 : vector<1x128xf32>
    %34 = math.log %33 : vector<1x128xf32>
    %35 = arith.addf %27, %34 : vector<1x128xf32>
    %36 = arith.addf %25, %35 : vector<1x128xf32>
    %c0_18 = arith.constant 0 : index
    %c0_19 = arith.constant 0 : index
    %37 = vector.load %arg5[%c0_18, %c0_19] : memref<1x128xf32, #tpu.memory_space<vmem>>, vector<1x128xf32>
    tpu.vector_store %arg5[%c0_18, %c0_19], %36 {strides = array<i32>} : memref<1x128xf32, #tpu.memory_space<vmem>>, vector<1x128xf32>,
    return
  }
  func.func @transform_0(%arg0: i32) -> (i32, i32) {
    %c0_i32 = arith.constant 0 : i32
    %c0_i32_0 = arith.constant 0 : i32
    return %arg0, %c0_i32 : i32, i32
  }
  func.func @transform_1(%arg0: i32) -> (i32, i32) {
    %c0_i32 = arith.constant 0 : i32
    %c0_i32_0 = arith.constant 0 : i32
    return %arg0, %c0_i32 : i32, i32
  }
  func.func @transform_2(%arg0: i32) -> (i32, i32) {
    %c0_i32 = arith.constant 0 : i32
    %c0_i32_0 = arith.constant 0 : i32
    return %arg0, %c0_i32 : i32, i32
  }
  func.func @transform_3(%arg0: i32) -> (i32, i32) {
    %c0_i32 = arith.constant 0 : i32
    %c0_i32_0 = arith.constant 0 : i32
    %c0_i32_1 = arith.constant 0 : i32
    return %c0_i32, %c0_i32_0 : i32, i32
  }
  func.func @transform_4(%arg0: i32) -> (i32, i32) {
    %c0_i32 = arith.constant 0 : i32
    %c0_i32_0 = arith.constant 0 : i32
    return %c0_i32, %arg0 : i32, i32
  }
}

</mosaic_0001>

<bundles_post_ra>
// kernel: tpu_custom_call.1
= control target key start
LH: loop header
LB: loop body
LE: loop exit
PB: predicated region body
PF: predicated region fallthrough
CT: control target
= control target key end

     0   :  { %vm83_vm0 = vcmask 130048   ;;  %s1101_s0 = inlined_call_operand.vmem [shape: bf16[128,16], index: 0, kind: input, shape index: {}]   ;;  %s1102_s1 = inlined_call_operand.vmem [shape: bf16[128,32], index: 1, kind: input, shape index: {}]   ;;  %s1103_s2 = inlined_call_operand.vmem [shape: bf16[128,32], index: 2, kind: input, shape index: {}]   ;;  %s1104_s3 = inlined_call_operand.vmem [shape: bf16[16,32], index: 3, kind: input, shape index: {}]   ;;  %s1105_s4 = inlined_call_operand.hbm [shape: f32[1,128], index: 4, kind: output, shape index: {}]  }
   0x1   :  { %v839_v0 = vld [vmem:[%s1104_s3] sm:$0xff]   ;;  %v841_v2 = vld [vmem:[%s1101_s0 + $0x8] sm:$0xff]   ;;  %v842_v3 = vld [vmem:[%s1101_s0 + $0x10] sm:$0xff]  }
   0x2   :  { %v840_v1 = vld [vmem:[%s1101_s0] sm:$0xff]   ;;  %747 = vmatprep.subr.bf16.mxu0 %v839_v0 }
   0x3   :  { %748 = vmatpush3.bf16.msra.mxu0 %v839_v0  ;;  %749 = vmatprep.mubr.msk.bf16.mxu0 %vm83_vm0, %v840_v1 }
   0x6   :  { %750 = vmatmul.mubr.msk.bf16.vlgmr.msra.gmra.mxu0 %vm83_vm0, %v841_v2 }
   0x7   :  { %753 = vmatprep.mubr.msk.bf16.mxu0 %vm83_vm0, %v842_v3 }
   0x8   :  { %9 = vsyncpa [#allocation3], 0  ;;  %v843_v4 = vld [vmem:[%s1101_s0 + $0x18] sm:$0xff]   ;;  %v844_v5 = vld [vmem:[%s1101_s0 + $0x20] sm:$0xff]   ;;  %v878_v9 = vmov 0.0   ;;  %vm879_vm1 = vmmov 0  }
   0x9   :  { %v845_v6 = vld [vmem:[%s1101_s0 + $0x28] sm:$0xff]   ;;  %v846_v7 = vld [vmem:[%s1101_s0 + $0x30] sm:$0xff]   ;;  %v847_v8 = vld [vmem:[%s1101_s0 + $0x38] sm:$0xff]   ;;  %765 = vmatprep.subr.mxu1 %v878_v9  ;;  %800 = vmatprep.subr.mxu0 %v878_v9  ;;  %vm285_vm2 = vcmask 261120  }
   0xa   :  { %797 = vmatprep.mubr.msk.f32.mxu1 %vm879_vm1, %v878_v9  ;;  %v696_v23 = vld [vmem:[%s1102_s1 + $0x38] sm:$0xff]   ;;  %v695_v33 = vld [vmem:[%s1102_s1 + $0x30] sm:$0xff]   ;;  %v694_v44 = vld [vmem:[%s1102_s1 + $0x28] sm:$0xff]  }
   0xb   :  { %v703_v24 = vld [vmem:[%s1103_s2 + $0x38] sm:$0xff]   ;;  %v657_v25 = vunpack.c.h.bf16 %v696_v23  ;;  %v656_v29 = vunpack.c.l.bf16 %v696_v23  ;;  %v702_v34 = vld [vmem:[%s1103_s2 + $0x30] sm:$0xff]   ;;  %v653_v37 = vunpack.c.h.bf16 %v695_v33  ;;  %v652_v40 = vunpack.c.l.bf16 %v695_v33  ;;  %v701_v45 = vld [vmem:[%s1103_s2 + $0x28] sm:$0xff]  }
   0xc   :  { %v689_v26 = vunpack.c.h.bf16 %v703_v24  ;;  %v688_v30 = vunpack.c.l.bf16 %v703_v24  ;;  %v685_v38 = vunpack.c.h.bf16 %v702_v34  ;;  %v684_v41 = vunpack.c.l.bf16 %v702_v34  ;;  %v693_v54 = vld [vmem:[%s1102_s1 + $0x20] sm:$0xff]   ;;  %v692_v0 = vld [vmem:[%s1102_s1 + $0x18] sm:$0xff]  }
   0xd   :  { %v649_v46 = vunpack.c.h.bf16 %v694_v44  ;;  %v681_v47 = vunpack.c.h.bf16 %v701_v45  ;;  %v648_v50 = vunpack.c.l.bf16 %v694_v44  ;;  %v680_v51 = vunpack.c.l.bf16 %v701_v45  ;;  %v700_v55 = vld [vmem:[%s1103_s2 + $0x20] sm:$0xff]   ;;  %v699_v1 = vld [vmem:[%s1103_s2 + $0x18] sm:$0xff]  }
   0xe   :  { %754 = vmatmul.mubr.msk.bf16.gmra.mxu0 %vm83_vm0, %v843_v4  ;;  %v645_v58 = vunpack.c.h.bf16 %v693_v54  ;;  %v677_v59 = vunpack.c.h.bf16 %v700_v55  ;;  %v644_v60 = vunpack.c.l.bf16 %v693_v54  ;;  %v676_v61 = vunpack.c.l.bf16 %v700_v55 }
   0xf   :  { %757 = vmatprep.mubr.msk.bf16.mxu0 %vm83_vm0, %v844_v5  ;;  %v641_v2 = vunpack.c.h.bf16 %v692_v0  ;;  %v673_v3 = vunpack.c.h.bf16 %v699_v1  ;;  %v880_v45 = vmov 1.0  }
  0x16   :  { %758 = vmatmul.mubr.msk.bf16.gmra.mxu0 %vm83_vm0, %v845_v6  ;;  %v640_v6 = vunpack.c.l.bf16 %v692_v0 }
  0x17   :  { %761 = vmatprep.mubr.msk.bf16.mxu0 %vm83_vm0, %v846_v7  ;;  %v672_v7 = vunpack.c.l.bf16 %v699_v1 }
  0x1e   :  { %762 = vmatmul.mubr.msk.bf16.gmra.mxu0 %vm83_vm0, %v847_v8 }
  0x1f   :  { %832 = vmatprep.mubr.msk.f32.mxu0 %vm879_vm1, %v878_v9 }
  0xc6   :  { %v946_v10 = vpop.f32.mrf.mxu0 }
  0xc8   :  { %v948_v11 = vpop.f32.mrf.mxu0 }
  0xca   :  { %v950_v12 = vpop.f32.mrf.mxu0 }
  0xcc   :  { %v952_v13 = vpop.f32.mrf.mxu0 }
  0xce   :  { %v954_v14 = vpop.f32.mrf.mxu0 }
  0xd0   :  { %v956_v15 = vpop.f32.mrf.mxu0 }
  0xd2   :  { %v958_v16 = vpop.f32.mrf.mxu0 }
  0xd3   :  { %v276_v8 = vmul.f32 %v958_v16, %v641_v2 }
  0xd4   :  { %v960_v17 = vpop.f32.mrf.mxu0 }
  0xd6   :  { %v759_v18 = vpop.f32.mrf.mxu0 }
  0xd7   :  { %v279_v56 = vmul.f32 %v759_v18, %v648_v50  ;;  %v417_v57 = vmul.f32 %v759_v18, %v680_v51  ;;  %v414_v18 = vmul.f32 %v958_v16, %v673_v3  ;;  %v413_v16 = vmul.f32 %v954_v14, %v672_v7 }
  0xd8   :  { %v962_v19 = vpop.f32.mrf.mxu0 }
  0xd9   :  { %v277_v4 = vmul.f32 %v644_v60, %v962_v19  ;;  %v415_v5 = vmul.f32 %v676_v61, %v962_v19  ;;  %v691_v19 = vld [vmem:[%s1102_s1 + $0x10] sm:$0xff]  }
  0xda   :  { %v760_v20 = vpop.f32.mrf.mxu0  ;;  %v636_v24 = vunpack.c.l.bf16 %v691_v19 }
  0xdb   :  { %v280_v52 = vmul.f32 %v760_v20, %v649_v46  ;;  %v418_v53 = vmul.f32 %v760_v20, %v681_v47  ;;  %v698_v20 = vld [vmem:[%s1103_s2 + $0x10] sm:$0xff]  }
  0xdc   :  { %v964_v21 = vpop.f32.mrf.mxu0  ;;  %v669_v23 = vunpack.c.h.bf16 %v698_v20 }
  0xdd   :  { %v278_v62 = vmul.f32 %v645_v58, %v964_v21  ;;  %v416_v63 = vmul.f32 %v677_v59, %v964_v21  ;;  %v275_v21 = vmul.f32 %v954_v14, %v640_v6  ;;  %v690_v14 = vld [vmem:[%s1102_s1 + $0x8] sm:$0xff]  }
  0xde   :  { %v763_v22 = vpop.f32.mrf.mxu0 }
  0xdf   :  { %v283_v35 = vmul.f32 %v763_v22, %v656_v29  ;;  %v421_v36 = vmul.f32 %v763_v22, %v688_v30  ;;  %v637_v22 = vunpack.c.h.bf16 %v691_v19  ;;  %v633_v29 = vunpack.c.h.bf16 %v690_v14 }
  0xe0   :  { %v190_v27 = vpop.f32.mrf.mxu0 }
  0xe1   :  { %v281_v48 = vmul.f32 %v652_v40, %v190_v27  ;;  %v419_v49 = vmul.f32 %v684_v41, %v190_v27  ;;  %v412_v27 = vmul.f32 %v669_v23, %v960_v17  ;;  %v272_v34 = vmul.f32 %v950_v12, %v633_v29 }
  0xe2   :  { %v764_v28 = vpop.f32.mrf.mxu0 }
  0xe3   :  { %v284_v31 = vmul.f32 %v764_v28, %v657_v25  ;;  %v422_v32 = vmul.f32 %v764_v28, %v689_v26  ;;  %v668_v25 = vunpack.c.l.bf16 %v698_v20  ;;  %v274_v26 = vmul.f32 %v637_v22, %v960_v17  ;;  %v697_v28 = vld [vmem:[%s1103_s2 + $0x8] sm:$0xff]  }
  0xe4   :  { %v193_v39 = vpop.f32.mrf.mxu0  ;;  %v665_v30 = vunpack.c.h.bf16 %v697_v28  ;;  %v273_v17 = vmul.f32 %v636_v24, %v956_v15  ;;  %v664_v33 = vunpack.c.l.bf16 %v697_v28 }
  0xe5   :  { %766 = vmatpush3.xpose.msk.msra.mxu1 %vm285_vm2, %v284_v31  ;;  %801 = vmatpush3.xpose.msk.msra.mxu0 %vm285_vm2, %v422_v32  ;;  %v282_v42 = vmul.f32 %v653_v37, %v193_v39  ;;  %v420_v43 = vmul.f32 %v685_v38, %v193_v39  ;;  %v411_v31 = vmul.f32 %v668_v25, %v956_v15  ;;  %v632_v32 = vunpack.c.l.bf16 %v690_v14  ;;  %v627_v15 = vld [vmem:[%s1102_s1] sm:$0xff]   ;;  %s881_s1 = smov [#allocation2]  }
  0xe6   :  { %767 = vmatprep.subr.mxu1 %v878_v9  ;;  %802 = vmatprep.subr.mxu0 %v878_v9  ;;  %v629_v38 = vunpack.c.h.bf16 %v627_v15  ;;  %v628_v40 = vunpack.c.l.bf16 %v627_v15 }
  0xe7   :  { %v271_v37 = vmul.f32 %v946_v10, %v632_v32 }
  0xe9   :  { %768 = vmatpush3.xpose.msk.msra.mxu1 %vm285_vm2, %v283_v35  ;;  %803 = vmatpush3.xpose.msk.msra.mxu0 %vm285_vm2, %v421_v36  ;;  %v410_v35 = vmul.f32 %v950_v12, %v665_v30  ;;  %v659_v36 = vld [vmem:[%s1103_s2] sm:$0xff]   ;;  %v409_v12 = vmul.f32 %v946_v10, %v664_v33  ;;  %v269_v10 = vmul.f32 %v628_v40, %v948_v11  ;;  %s567_s2 = sshll.u32 %s881_s1, 4  ;;  %s568_s2 = int_to_ptr.vmem [resolvable:$true] %s567_s2 }
  0xea   :  { %769 = vmatprep.subr.mxu1 %v878_v9  ;;  %804 = vmatprep.subr.mxu0 %v878_v9  ;;  %v661_v39 = vunpack.c.h.bf16 %v659_v36  ;;  %v660_v41 = vunpack.c.l.bf16 %v659_v36  ;;  %s856_s9 = scalar_lea.vmem %s568_s2, 16  ;;  %s860_s10 = scalar_lea.vmem %s568_s2, 32 }
  0xeb   :  { %p857_p0 = scmp.ne.s32.totalorder %s568_s2, %s856_s9  ;;  %p861_p1 = scmp.lt.s32.totalorder %s568_s2, %s568_s2 }
  0xec   :  { %v407_v44 = vmul.f32 %v660_v41, %v948_v11  ;;  %p862_p2 = scmp.lt.s32.totalorder %s860_s10, %s856_s9 }
  0xed   :  { %770 = vmatpush3.xpose.msk.msra.mxu1 %vm285_vm2, %v282_v42  ;;  %805 = vmatpush3.xpose.msk.msra.mxu0 %vm285_vm2, %v420_v43  ;;  %v270_v42 = vmul.f32 %v629_v38, %v952_v13  ;;  %v408_v43 = vmul.f32 %v661_v39, %v952_v13 }
  0xee   :  { %771 = vmatprep.subr.mxu1 %v878_v9  ;;  %806 = vmatprep.subr.mxu0 %v878_v9  ;;  %p863_p3 = por %p862_p2, %p861_p1 }
  0xf0   :  { %p864_p4 = pnand %p863_p3, %p857_p0 }
  0xf1   :  { %772 = vmatpush3.xpose.msk.msra.mxu1 %vm285_vm2, %v281_v48  ;;  %807 = vmatpush3.xpose.msk.msra.mxu0 %vm285_vm2, %v419_v49 }
  0xf2   :  { %773 = vmatprep.subr.mxu1 %v878_v9  ;;  %808 = vmatprep.subr.mxu0 %v878_v9 }
  0xf5   :  { %774 = vmatpush3.xpose.msk.msra.mxu1 %vm285_vm2, %v280_v52  ;;  %809 = vmatpush3.xpose.msk.msra.mxu0 %vm285_vm2, %v418_v53 }
  0xf6   :  { %775 = vmatprep.subr.mxu1 %v878_v9  ;;  %810 = vmatprep.subr.mxu0 %v878_v9 }
  0xf9   :  { %776 = vmatpush3.xpose.msk.msra.mxu1 %vm285_vm2, %v279_v56  ;;  %811 = vmatpush3.xpose.msk.msra.mxu0 %vm285_vm2, %v417_v57 }
  0xfa   :  { %777 = vmatprep.subr.mxu1 %v878_v9  ;;  %812 = vmatprep.subr.mxu0 %v878_v9 }
  0xfd   :  { %778 = vmatpush3.xpose.msk.msra.mxu1 %vm285_vm2, %v278_v62  ;;  %813 = vmatpush3.xpose.msk.msra.mxu0 %vm285_vm2, %v416_v63 }
  0xfe   :  { %779 = vmatprep.subr.mxu1 %v878_v9  ;;  %814 = vmatprep.subr.mxu0 %v878_v9 }
 0x101   :  { %780 = vmatpush3.xpose.msk.msra.mxu1 %vm285_vm2, %v277_v4  ;;  %815 = vmatpush3.xpose.msk.msra.mxu0 %vm285_vm2, %v415_v5 }
 0x102   :  { %781 = vmatprep.subr.mxu1 %v878_v9  ;;  %816 = vmatprep.subr.mxu0 %v878_v9 }
 0x105   :  { %782 = vmatpush3.xpose.msk.msra.mxu1 %vm285_vm2, %v276_v8  ;;  %817 = vmatpush3.xpose.msk.msra.mxu0 %vm285_vm2, %v414_v18 }
 0x106   :  { %783 = vmatprep.subr.mxu1 %v878_v9  ;;  %818 = vmatprep.subr.mxu0 %v878_v9 }
 0x109   :  { %784 = vmatpush3.xpose.msk.msra.mxu1 %vm285_vm2, %v275_v21  ;;  %819 = vmatpush3.xpose.msk.msra.mxu0 %vm285_vm2, %v413_v16 }
 0x10a   :  { %785 = vmatprep.subr.mxu1 %v878_v9  ;;  %820 = vmatprep.subr.mxu0 %v878_v9 }
 0x10d   :  { %786 = vmatpush3.xpose.msk.msra.mxu1 %vm285_vm2, %v274_v26  ;;  %821 = vmatpush3.xpose.msk.msra.mxu0 %vm285_vm2, %v412_v27 }
 0x10e   :  { %787 = vmatprep.subr.mxu1 %v878_v9  ;;  %822 = vmatprep.subr.mxu0 %v878_v9 }
 0x111   :  { %788 = vmatpush3.xpose.msk.msra.mxu1 %vm285_vm2, %v273_v17  ;;  %823 = vmatpush3.xpose.msk.msra.mxu0 %vm285_vm2, %v411_v31 }
 0x112   :  { %789 = vmatprep.subr.mxu1 %v878_v9  ;;  %824 = vmatprep.subr.mxu0 %v878_v9 }
 0x115   :  { %790 = vmatpush3.xpose.msk.msra.mxu1 %vm285_vm2, %v272_v34  ;;  %825 = vmatpush3.xpose.msk.msra.mxu0 %vm285_vm2, %v410_v35 }
 0x116   :  { %791 = vmatprep.subr.mxu1 %v878_v9  ;;  %826 = vmatprep.subr.mxu0 %v878_v9 }
 0x119   :  { %792 = vmatpush3.xpose.msk.msra.mxu1 %vm285_vm2, %v271_v37  ;;  %827 = vmatpush3.xpose.msk.msra.mxu0 %vm285_vm2, %v409_v12 }
 0x11a   :  { %793 = vmatprep.subr.mxu1 %v878_v9  ;;  %828 = vmatprep.subr.mxu0 %v878_v9 }
 0x11d   :  { %794 = vmatpush3.xpose.msk.msra.mxu1 %vm285_vm2, %v270_v42  ;;  %829 = vmatpush3.xpose.msk.msra.mxu0 %vm285_vm2, %v408_v43 }
 0x11e   :  { %795 = vmatprep.subr.mxu1 %v878_v9  ;;  %830 = vmatprep.subr.mxu0 %v878_v9 }
 0x121   :  { %796 = vmatpush3.xpose.msk.msra.mxu1 %vm285_vm2, %v269_v10  ;;  %831 = vmatpush3.xpose.msk.msra.mxu0 %vm285_vm2, %v407_v44 }
 0x124   :  { %798 = vmatmul.mubr.msk.f32.vlgmr.msra.gmra.mxu1 %vm285_vm2, %v880_v45  ;;  %833 = vmatmul.mubr.msk.f32.vlgmr.msra.gmra.mxu0 %vm285_vm2, %v880_v45 }
 0x1e4   :  { %v403_v13 = vpop.f32.mrf.mxu1  ;;  %v537_v46 = vpop.f32.mrf.mxu0 }
 0x1e5   :  { %v404_v47 = vadd.f32 0.17159988, %v403_v13  ;;  %v538_v48 = vadd.f32 0.17159988, %v537_v46 }
 0x1e6   :  { %v799_v49 = vpop.f32.mrf.mxu1  ;;  %v834_v50 = vpop.f32.mrf.mxu0 }
 0x1e7   :  { %v542_v9 = vand.u32 2147483647, %v404_v47  ;;  %v551_v51 = vand.u32 2147483647, %v538_v48  ;;  %v541_v61 = vmax.f32 %v404_v47, 0.0  ;;  %v550_v63 = vmax.f32 %v538_v48, 0.0 }
 0x1e9   :  { %v543_v52 = vsub.f32 0.0, %v542_v9  ;;  %v552_v53 = vsub.f32 0.0, %v551_v51 }
 0x1eb   :  { %v544_v11 = vmul.f32 1.442695, %v543_v52  ;;  %v553_v54 = vmul.f32 1.442695, %v552_v53 }
 0x1ed   :  { %848 = vpow2.f32 %v544_v11 }
 0x1ee   :  { %850 = vpow2.f32 %v553_v54 }
 0x1fa   :  { %v849_v55 = vpop.eup %848 }
 0x1fb   :  { %v851_v56 = vpop.eup %850  ;;  %v546_v57 = vadd.f32 1.0, %v849_v55 }
 0x1fc   :  { %v555_v58 = vadd.f32 1.0, %v851_v56 }
 0x1fd   :  { %852 = vlog2.f32 %v546_v57 }
 0x1fe   :  { %854 = vlog2.f32 %v555_v58 }
 0x20a   :  { %v853_v59 = vpop.eup %852 }
 0x20b   :  { %v855_v60 = vpop.eup %854  ;;  %v548_v62 = vmul.f32 0.6931472, %v853_v59 }
 0x20c   :  { %v557_v0 = vmul.f32 0.6931472, %v855_v60 }
 0x20d   :  { %v549_v1 = vadd.f32 %v548_v62, %v541_v61 }
 0x20e   :  { %v558_v2 = vadd.f32 %v557_v0, %v550_v63 }
 0x210   :  { %v559_v3 = vadd.f32 %v558_v2, %v549_v1 }
 0x212   :  { %560 = vst [vmem:[#allocation2] sm:$0x1] %v559_v3 }
 0x213   :  { %867 = shalt.err (!%p864_p4)
}
 0x214   :  { %570 = dma.vmem_to_hbm [thread:$0]  %s568_s2, 16, %s1105_s4, [#allocation3]  }
 0x215   :  { %876 = dma.done.wait [#allocation3], 16  }
 0x216   :  { %877 = vsyncadd [#allocation3], 4294967280 }
 0x217   :  { %574 = vsyncpa [#allocation3], 1 }

</bundles_post_ra>
